<compile_context>
chip_gen: v5e
topology: v5e:2x2
jax: 0.10.0
libtpu: 0.0.40
codegen_flags: <defaults>
</compile_context>

<pallas_src>
import jax
import jax.numpy as jnp
from jax.experimental import pallas as pl
from jax.experimental.pallas import tpu as pltpu

_LANE = 128   # lane width (last-dim tiling unit)


def _round_up(x, m):
    return (x + m - 1) // m * m


def _sublane_align(dtype):
    """Row-tile granularity for a dtype (sublane packing)."""
    isz = jnp.dtype(dtype).itemsize
    if isz >= 4:
        return 8
    if isz == 2:
        return 16
    return 32


def _vmem_capacity_bytes():
    try:
        cap = int(pltpu.get_tpu_info().vmem_capacity_bytes)
        if cap > 0:
            return cap
    except Exception:
        pass
    return 64 * 1024 * 1024   # conservative fallback (v7x: 64 MiB per TensorCore)


def _mlp_kernel(x_ref, w1_ref, b1_ref, w2_ref, b2_ref, w3_ref, b3_ref, o_ref):
    """Fused 3-layer MLP on one batch tile. Accumulation / bias / ReLU in f32."""
    cdt = w1_ref.dtype
    x = x_ref[...].astype(cdt)                  # cast per tile (no HBM copy of x)
    # Layer 1: Linear + ReLU
    h1 = jnp.dot(x, w1_ref[...], preferred_element_type=jnp.float32)
    h1 = jnp.maximum(h1 + b1_ref[...], 0.0)     # b is [1, H] -> sublane bcast
    # Layer 2: Linear + ReLU
    h2 = jnp.dot(h1.astype(cdt), w2_ref[...], preferred_element_type=jnp.float32)
    h2 = jnp.maximum(h2 + b2_ref[...], 0.0)
    # Layer 3: Linear (no activation)
    out = jnp.dot(h2.astype(cdt), w3_ref[...], preferred_element_type=jnp.float32)
    o_ref[...] = (out + b3_ref[...]).astype(o_ref.dtype)


def prepare_params(params, compute_dtype=jnp.bfloat16):
    """One-time weight preprocessing (transpose -> [in,out], lane-pad, cast).

    params follow the PyTorch convention:
      w1: [hidden, input], b1: [hidden]
      w2: [hidden, hidden], b2: [hidden]
      w3: [output, hidden], b3: [output]
    Zero-padding of hidden/output feature dims is exact for this MLP.
    """
    hidden_dim, input_dim = params["w1"].shape
    output_dim = params["w3"].shape[0]
    hid_p = _round_up(hidden_dim, _LANE)
    out_p = _round_up(output_dim, _LANE)

    def pad2(a, rows, cols):
        return jnp.pad(a, ((0, rows - a.shape[0]), (0, cols - a.shape[1])))

    w1 = pad2(params["w1"].T, input_dim, hid_p).astype(compute_dtype)  # K unpadded
    w2 = pad2(params["w2"].T, hid_p, hid_p).astype(compute_dtype)
    w3 = pad2(params["w3"].T, hid_p, out_p).astype(compute_dtype)
    # Biases stay f32 ([1, N]) so the in-kernel epilogue is exact f32.
    b1 = jnp.pad(params["b1"], (0, hid_p - hidden_dim)).reshape(1, hid_p).astype(jnp.float32)
    b2 = jnp.pad(params["b2"], (0, hid_p - hidden_dim)).reshape(1, hid_p).astype(jnp.float32)
    b3 = jnp.pad(params["b3"], (0, out_p - output_dim)).reshape(1, out_p).astype(jnp.float32)

    return {
        "w1": w1, "b1": b1, "w2": w2, "b2": b2, "w3": w3, "b3": b3,
        "dims": (input_dim, hidden_dim, output_dim),
        "compute_dtype": jnp.dtype(compute_dtype),
    }


def _choose_batch_tile(batch, row_align, per_row, weight_bytes, vmem_budget_bytes):
    """Largest aligned batch tile fitting the VMEM budget, capped so that a
    large batch yields >= 2 grid steps (both TensorCores on v7x)."""
    b_ceil = _round_up(max(batch, 1), row_align)
    if b_ceil >= 2 * row_align:
        max_tile = _round_up((b_ceil + 1) // 2, row_align)
    else:
        max_tile = b_ceil
    budget_rows = max((vmem_budget_bytes - weight_bytes) // per_row, row_align)
    for cand in (1024, 512, 256, 128, 64, 32, 16, 8):
        if cand % row_align != 0 or cand > max_tile:
            continue
        if cand <= budget_rows:
            return cand
    return row_align


def state_encoder_apply(x, prep, *, batch_tile=None, vmem_budget_bytes=None):
    """Fused StateEncoder forward with pre-prepared params (see prepare_params)."""
    input_dim, hidden_dim, output_dim = prep["dims"]
    compute_dtype = prep["compute_dtype"]
    B, in_x = x.shape
    assert in_x == input_dim, f"x feature dim {in_x} != param input_dim {input_dim}"
    out_dtype = x.dtype

    hid_p = prep["w1"].shape[1]
    out_p = prep["w3"].shape[1]

    cap = _vmem_capacity_bytes()
    if vmem_budget_bytes is None:
        vmem_budget_bytes = int(cap * 0.72)   # ~46 MiB on v7x, ~92 MiB on v5e/v6e

    act = jnp.dtype(compute_dtype).itemsize
    x_isz = jnp.dtype(x.dtype).itemsize
    out_isz = jnp.dtype(out_dtype).itemsize
    row_align = max(_sublane_align(x.dtype), _sublane_align(compute_dtype))

    # Resident (single-buffered) weight/bias bytes in VMEM.
    in_sub = _round_up(input_dim, _sublane_align(compute_dtype))
    weight_bytes = ((in_sub * hid_p + hid_p * hid_p + hid_p * out_p) * act
                    + (2 * hid_p + out_p) * 4)

    # Per-batch-row VMEM bytes: pipelined x/out tiles + live intermediates
    # (f32 h1/h2 + their compute-dtype re-casts + f32 out temp + cast of x).
    in_vmem = _round_up(input_dim, _LANE)   # lanes are padded to 128 in VMEM
    per_row = (2 * in_vmem * x_isz          # x tile (double-buffered)
               + in_vmem * act              # in-kernel cast of x
               + 2 * out_p * out_isz        # out tile (double-buffered)
               + out_p * 4                  # f32 out temp before dtype cast
               + 2 * hid_p * (4 + act))     # h1/h2 f32 + compute-dtype recasts

    if weight_bytes + row_align * per_row > vmem_budget_bytes:
        # TODO(synk): stream w2/w3 tiles over an extra K/N grid axis
        # (Buffered(2) + f32 VMEM accumulator + pl.when init/finalize) when the
        # resident-weight scheme exceeds per-core VMEM (hidden_dim ~>=2k on v7x).
        raise NotImplementedError(
            f"StateEncoder resident weights ({weight_bytes / 2**20:.1f} MiB) do not "
            f"fit the VMEM budget ({vmem_budget_bytes / 2**20:.1f} MiB); weight "
            "streaming is not implemented.")

    if batch_tile is None:
        batch_tile = _choose_batch_tile(B, row_align, per_row, weight_bytes,
                                        vmem_budget_bytes)
    batch_tile = min(batch_tile, _round_up(B, row_align))
    assert batch_tile % row_align == 0, (
        f"batch_tile must be a multiple of {row_align} for x dtype {x.dtype} / "
        f"compute dtype {compute_dtype}")

    grid = (pl.cdiv(B, batch_tile),)   # last block may be partial; writes masked

    footprint = weight_bytes + batch_tile * per_row
    vmem_limit = min(max(int(footprint * 1.3) + (4 << 20), 16 << 20),
                     int(cap * 0.92))

    # Weights/biases have a constant index_map across the grid -> single VMEM
    # buffer (no double-buffering), freeing VMEM for a larger batch tile.
    def resident(shape):
        return pl.BlockSpec(shape, lambda i: (0, 0), pipeline_mode=pl.Buffered(1))

    out = pl.pallas_call(
        _mlp_kernel,
        out_shape=jax.ShapeDtypeStruct((B, out_p), out_dtype),
        grid_spec=pltpu.PrefetchScalarGridSpec(
            num_scalar_prefetch=0,
            grid=grid,
            in_specs=[
                # x streamed unpadded: last block dim == full array dim (legal),
                # so no HBM-side jnp.pad copy and no inflated DMA volume.
                pl.BlockSpec((batch_tile, input_dim), lambda i: (i, 0)),
                resident(prep["w1"].shape),    # w1
                resident(prep["b1"].shape),    # b1
                resident(prep["w2"].shape),    # w2
                resident(prep["b2"].shape),    # b2
                resident(prep["w3"].shape),    # w3
                resident(prep["b3"].shape),    # b3
            ],
            out_specs=pl.BlockSpec((batch_tile, out_p), lambda i: (i, 0)),
        ),
        compiler_params=pltpu.CompilerParams(
            dimension_semantics=("parallel",),   # batch axis -> both TCs on v7x
            vmem_limit_bytes=vmem_limit,
        ),
    )(x, prep["w1"], prep["b1"], prep["w2"], prep["b2"], prep["w3"], prep["b3"])

    if out_p != output_dim:
        out = out[:, :output_dim]
    return out


def state_encoder_forward(x, params, *, compute_dtype=jnp.bfloat16,
                          batch_tile=None, vmem_budget_bytes=None):
    """Convenience one-shot wrapper (prepares params every call). For repeated
    forwards with fixed params, call prepare_params once and state_encoder_apply."""
    prep = prepare_params(params, compute_dtype=compute_dtype)
    return state_encoder_apply(x, prep, batch_tile=batch_tile,
                               vmem_budget_bytes=vmem_budget_bytes)


def init_params(key, input_dim, hidden_dim, output_dim):
    """Deterministic init mimicking nn.Linear's uniform(-1/sqrt(fan_in), +)."""
    ks = jax.random.split(key, 6)

    def linear_init(kw, kb, fan_in, fan_out):
        bound = 1.0 / jnp.sqrt(fan_in)
        w = jax.random.uniform(kw, (fan_out, fan_in), jnp.float32, -bound, bound)
        b = jax.random.uniform(kb, (fan_out,), jnp.float32, -bound, bound)
        return w, b

    w1, b1 = linear_init(ks[0], ks[1], input_dim, hidden_dim)
    w2, b2 = linear_init(ks[2], ks[3], hidden_dim, hidden_dim)
    w3, b3 = linear_init(ks[4], ks[5], hidden_dim, output_dim)
    return {"w1": w1, "b1": b1, "w2": w2, "b2": b2, "w3": w3, "b3": b3}


def _reference_forward(x, p):
    h = jnp.maximum(x @ p["w1"].T + p["b1"], 0.0)
    h = jnp.maximum(h @ p["w2"].T + p["b2"], 0.0)
    return h @ p["w3"].T + p["b3"]


if __name__ == "__main__":
    key = jax.random.PRNGKey(0)
    k1, k2, k3, k4 = jax.random.split(key, 4)

    # Case 1: tiny spec-sized shapes, exact f32 compute path (grid=(1,)).
    B, in_d, hid_d, out_d = 8, 16, 32, 32
    x = jax.random.normal(k1, (B, in_d), jnp.float32)
    params = init_params(k2, in_d, hid_d, out_d)
    out = jax.block_until_ready(
        state_encoder_forward(x, params, compute_dtype=jnp.float32))
    ref = _reference_forward(x, params)
    assert out.shape == (B, out_d)
    assert jnp.allclose(out, ref, atol=1e-5, rtol=1e-5), "f32 small-case mismatch"

    # Case 2: default bf16 MXU path; weights prepared once and reused; auto
    # batch tile gives 2 grid steps (both TensorCores on v7x).
    B2, in_d2, hid_d2, out_d2 = 64, 48, 96, 80
    x2 = jax.random.normal(k3, (B2, in_d2), jnp.float32)
    params2 = init_params(k4, in_d2, hid_d2, out_d2)
    prep_bf16 = prepare_params(params2)                     # bf16 weights, once
    out2 = jax.block_until_ready(state_encoder_apply(x2, prep_bf16))
    out2b = jax.block_until_ready(state_encoder_apply(x2, prep_bf16))  # reuse prep
    ref2 = _reference_forward(x2, params2)
    assert out2.shape == (B2, out_d2)
    assert jnp.allclose(out2, ref2, atol=5e-2, rtol=5e-2), "bf16 case mismatch"
    assert jnp.allclose(out2, out2b), "bf16 repeat-call mismatch"

    # Case 3: f32 compute, ragged batch (B not a multiple of the tile) to
    # exercise the cdiv grid / masked partial last block, explicit batch_tile.
    B3 = 70
    x3 = jax.random.normal(jax.random.PRNGKey(5), (B3, in_d2), jnp.float32)
    prep_f32 = prepare_params(params2, compute_dtype=jnp.float32)
    out3 = jax.block_until_ready(
        state_encoder_apply(x3, prep_f32, batch_tile=32))
    ref3 = _reference_forward(x3, params2)
    assert out3.shape == (B3, out_d2)
    assert jnp.allclose(out3, ref3, atol=1e-4, rtol=1e-4), "f32 ragged-case mismatch"

    print("KERNEL_OK")
</pallas_src>

<mosaic_0001>
module attributes {stable_mosaic.version = 11 : i64} {
  func.func @_mlp_kernel(%arg0: i32, %arg1: memref<8x16xf32, #tpu.memory_space<vmem>>, %arg2: memref<16x128xf32, #tpu.memory_space<vmem>>, %arg3: memref<1x128xf32, #tpu.memory_space<vmem>>, %arg4: memref<128x128xf32, #tpu.memory_space<vmem>>, %arg5: memref<1x128xf32, #tpu.memory_space<vmem>>, %arg6: memref<128x128xf32, #tpu.memory_space<vmem>>, %arg7: memref<1x128xf32, #tpu.memory_space<vmem>>, %arg8: memref<8x128xf32, #tpu.memory_space<vmem>>) attributes {dimension_semantics = [#tpu.dimension_semantics<parallel>], iteration_bounds = array<i64: 1>, scalar_prefetch = 0 : i64, scratch_operands = 0 : i64, tpu.core_type = #tpu.core_type<tc>, window_params = [{transform_indices = @transform_0, window_bounds = array<i64: 8, 16>}, {pipeline_mode = #tpu.pipeline_mode<synchronous>, transform_indices = @transform_1, window_bounds = array<i64: 16, 128>}, {pipeline_mode = #tpu.pipeline_mode<synchronous>, transform_indices = @transform_2, window_bounds = array<i64: 1, 128>}, {pipeline_mode = #tpu.pipeline_mode<synchronous>, transform_indices = @transform_3, window_bounds = array<i64: 128, 128>}, {pipeline_mode = #tpu.pipeline_mode<synchronous>, transform_indices = @transform_4, window_bounds = array<i64: 1, 128>}, {pipeline_mode = #tpu.pipeline_mode<synchronous>, transform_indices = @transform_5, window_bounds = array<i64: 128, 128>}, {pipeline_mode = #tpu.pipeline_mode<synchronous>, transform_indices = @transform_6, window_bounds = array<i64: 1, 128>}, {transform_indices = @transform_7, window_bounds = array<i64: 8, 128>}]} {
    %c0 = arith.constant 0 : index
    %c0_0 = arith.constant 0 : index
    %0 = vector.load %arg1[%c0, %c0_0] : memref<8x16xf32, #tpu.memory_space<vmem>>, vector<8x16xf32>
    %c0_1 = arith.constant 0 : index
    %c0_2 = arith.constant 0 : index
    %1 = vector.load %arg2[%c0_1, %c0_2] : memref<16x128xf32, #tpu.memory_space<vmem>>, vector<16x128xf32>
    %cst = arith.constant dense<0.000000e+00> : vector<8x128xf32>
    %2 = tpu.matmul %0, %1, %cst {dimension_numbers = #tpu.dot_dimension_numbers<[1], [0], [0], [1], [0, 0, 1, 1], [], []>} : vector<8x16xf32>, vector<16x128xf32>, vector<8x128xf32> -> vector<8x128xf32>
    %c0_3 = arith.constant 0 : index
    %c0_4 = arith.constant 0 : index
    %3 = vector.load %arg3[%c0_3, %c0_4] : memref<1x128xf32, #tpu.memory_space<vmem>>, vector<1x128xf32>
    %4 = vector.broadcast %3 : vector<1x128xf32> to vector<8x128xf32>
    %5 = arith.addf %2, %4 : vector<8x128xf32>
    %cst_5 = arith.constant 0.000000e+00 : f32
    %6 = vector.broadcast %cst_5 : f32 to vector<8x128xf32>
    %7 = arith.maximumf %5, %6 : vector<8x128xf32>
    %c0_6 = arith.constant 0 : index
    %c0_7 = arith.constant 0 : index
    %8 = vector.load %arg4[%c0_6, %c0_7] : memref<128x128xf32, #tpu.memory_space<vmem>>, vector<128x128xf32>
    %cst_8 = arith.constant dense<0.000000e+00> : vector<8x128xf32>
    %9 = tpu.matmul %7, %8, %cst_8 {dimension_numbers = #tpu.dot_dimension_numbers<[1], [0], [0], [1], [0, 0, 1, 1], [], []>} : vector<8x128xf32>, vector<128x128xf32>, vector<8x128xf32> -> vector<8x128xf32>
    %c0_9 = arith.constant 0 : index
    %c0_10 = arith.constant 0 : index
    %10 = vector.load %arg5[%c0_9, %c0_10] : memref<1x128xf32, #tpu.memory_space<vmem>>, vector<1x128xf32>
    %11 = vector.broadcast %10 : vector<1x128xf32> to vector<8x128xf32>
    %12 = arith.addf %9, %11 : vector<8x128xf32>
    %cst_11 = arith.constant 0.000000e+00 : f32
    %13 = vector.broadcast %cst_11 : f32 to vector<8x128xf32>
    %14 = arith.maximumf %12, %13 : vector<8x128xf32>
    %c0_12 = arith.constant 0 : index
    %c0_13 = arith.constant 0 : index
    %15 = vector.load %arg6[%c0_12, %c0_13] : memref<128x128xf32, #tpu.memory_space<vmem>>, vector<128x128xf32>
    %cst_14 = arith.constant dense<0.000000e+00> : vector<8x128xf32>
    %16 = tpu.matmul %14, %15, %cst_14 {dimension_numbers = #tpu.dot_dimension_numbers<[1], [0], [0], [1], [0, 0, 1, 1], [], []>} : vector<8x128xf32>, vector<128x128xf32>, vector<8x128xf32> -> vector<8x128xf32>
    %c0_15 = arith.constant 0 : index
    %c0_16 = arith.constant 0 : index
    %17 = vector.load %arg7[%c0_15, %c0_16] : memref<1x128xf32, #tpu.memory_space<vmem>>, vector<1x128xf32>
    %18 = vector.broadcast %17 : vector<1x128xf32> to vector<8x128xf32>
    %19 = arith.addf %16, %18 : vector<8x128xf32>
    %c0_17 = arith.constant 0 : index
    %c0_18 = arith.constant 0 : index
    %20 = vector.load %arg8[%c0_17, %c0_18] : memref<8x128xf32, #tpu.memory_space<vmem>>, vector<8x128xf32>
    tpu.vector_store %arg8[%c0_17, %c0_18], %19 {strides = array<i32>} : memref<8x128xf32, #tpu.memory_space<vmem>>, vector<8x128xf32>,
    return
  }
  func.func @transform_0(%arg0: i32) -> (i32, i32) {
    %c0_i32 = arith.constant 0 : i32
    %c0_i32_0 = arith.constant 0 : i32
    return %arg0, %c0_i32 : i32, i32
  }
  func.func @transform_1(%arg0: i32) -> (i32, i32) {
    %c0_i32 = arith.constant 0 : i32
    %c0_i32_0 = arith.constant 0 : i32
    %c0_i32_1 = arith.constant 0 : i32
    return %c0_i32, %c0_i32_0 : i32, i32
  }
  func.func @transform_2(%arg0: i32) -> (i32, i32) {
    %c0_i32 = arith.constant 0 : i32
    %c0_i32_0 = arith.constant 0 : i32
    %c0_i32_1 = arith.constant 0 : i32
    return %c0_i32, %c0_i32_0 : i32, i32
  }
  func.func @transform_3(%arg0: i32) -> (i32, i32) {
    %c0_i32 = arith.constant 0 : i32
    %c0_i32_0 = arith.constant 0 : i32
    %c0_i32_1 = arith.constant 0 : i32
    return %c0_i32, %c0_i32_0 : i32, i32
  }
  func.func @transform_4(%arg0: i32) -> (i32, i32) {
    %c0_i32 = arith.constant 0 : i32
    %c0_i32_0 = arith.constant 0 : i32
    %c0_i32_1 = arith.constant 0 : i32
    return %c0_i32, %c0_i32_0 : i32, i32
  }
  func.func @transform_5(%arg0: i32) -> (i32, i32) {
    %c0_i32 = arith.constant 0 : i32
    %c0_i32_0 = arith.constant 0 : i32
    %c0_i32_1 = arith.constant 0 : i32
    return %c0_i32, %c0_i32_0 : i32, i32
  }
  func.func @transform_6(%arg0: i32) -> (i32, i32) {
    %c0_i32 = arith.constant 0 : i32
    %c0_i32_0 = arith.constant 0 : i32
    %c0_i32_1 = arith.constant 0 : i32
    return %c0_i32, %c0_i32_0 : i32, i32
  }
  func.func @transform_7(%arg0: i32) -> (i32, i32) {
    %c0_i32 = arith.constant 0 : i32
    %c0_i32_0 = arith.constant 0 : i32
    return %arg0, %c0_i32 : i32, i32
  }
}

</mosaic_0001>

<bundles_post_ra>
// kernel: tpu_custom_call.1
= control target key start
LH: loop header
LB: loop body
LE: loop exit
PB: predicated region body
PF: predicated region fallthrough
CT: control target
= control target key end

     0   :  { %12 = vsyncpa [#allocation3], 0  ;;  %s431_s0 = inlined_call_operand.hbm [shape: f32[8,16], index: 0, kind: input, shape index: {}]   ;;  %s432_s1 = inlined_call_operand.hbm [shape: f32[16,128], index: 1, kind: input, shape index: {}]   ;;  %s433_s2 = inlined_call_operand.vmem [shape: f32[1,128], index: 2, kind: input, shape index: {}]   ;;  %s434_s3 = inlined_call_operand.hbm [shape: f32[128,128], index: 3, kind: input, shape index: {}]   ;;  %s435_s4 = inlined_call_operand.vmem [shape: f32[1,128], index: 4, kind: input, shape index: {}]   ;;  %s436_s5 = inlined_call_operand.hbm [shape: f32[128,128], index: 5, kind: input, shape index: {}]   ;;  %s437_s6 = inlined_call_operand.vmem [shape: f32[1,128], index: 6, kind: input, shape index: {}]   ;;  %s438_s7 = inlined_call_operand.hbm [shape: f32[8,128], index: 7, kind: output, shape index: {}]  }
   0x1   :  { %13 = vsyncpa [#allocation6], 0 }
   0x2   :  { %14 = vsyncpa [#allocation9], 0  ;;  %s31_s26 = sshll.u32 %s432_s1, 4  ;;  %s32_s26 = int_to_ptr.hbm [resolvable:$true] %s31_s26 }
   0x3   :  { %15 = vsyncpa [#allocation4], 0  ;;  %s360_s27 = smov [#allocation5]   ;;  %s21_s8 = sshll.u32 %s431_s0, 4  ;;  %s22_s8 = int_to_ptr.hbm [resolvable:$true] %s21_s8 }
   0x4   :  { %s33_s28 = sshll.u32 %s360_s27, 4  ;;  %s361_s9 = smov 128   ;;  %s34_s28 = int_to_ptr.vmem [resolvable:$true] %s33_s28 }
   0x5   :  { %s362_s10 = smov 8   ;;  %s363_s11 = smov [#allocation2]  }
   0x6   :  { %39 = dma.hbm_to_vmem [thread:$0]  %s32_s26, 256, %s34_s28, [#allocation6], %s361_s9, %s361_s9, %s362_s10  }
   0x7   :  { %s23_s12 = sshll.u32 %s363_s11, 4  ;;  %s46_s15 = sshll.u32 %s434_s3, 4  ;;  %s24_s12 = int_to_ptr.vmem [resolvable:$true] %s23_s12  ;;  %s47_s15 = int_to_ptr.hbm [resolvable:$true] %s46_s15 }
   0x8   :  { %26 = dma.hbm_to_vmem [thread:$0]  %s22_s8, 128, %s24_s12, [#allocation3]  }
   0x9   :  { %s61_s17 = sshll.u32 %s436_s5, 4  ;;  %s364_s18 = smov [#allocation7]   ;;  %s62_s17 = int_to_ptr.hbm [resolvable:$true] %s61_s17 }
   0xa   :  { %s48_s19 = sshll.u32 %s364_s18, 4  ;;  %s365_s0 = smov [#allocation8]   ;;  %s49_s19 = int_to_ptr.vmem [resolvable:$true] %s48_s19 }
   0xb   :  { %54 = dma.hbm_to_vmem [thread:$0]  %s47_s15, 2048, %s49_s19, [#allocation6], %s361_s9, %s361_s9, %s362_s10  }
   0xc   :  { %s63_s20 = sshll.u32 %s365_s0, 4  ;;  %s64_s20 = int_to_ptr.vmem [resolvable:$true] %s63_s20 }
   0xd   :  { %69 = dma.hbm_to_vmem [thread:$0]  %s62_s17, 2048, %s64_s20, [#allocation9], %s361_s9, %s361_s9, %s362_s10  }
   0xe   :  { %352 = dma.done.wait [#allocation3], 128  }
   0xf   :  { %353 = vsyncadd [#allocation3], 4294967168 }
  0x10   :  { %354 = dma.done.wait [#allocation6], 2304  }
  0x11   :  { %355 = vsyncadd [#allocation6], 4294964992 }
  0x12   :  { %356 = dma.done.wait [#allocation9], 2048  }
  0x13   :  { %357 = vsyncadd [#allocation9], 4294965248  ;;  %v90_v0 = vld [vmem:[#allocation5 + $0x8] sm:$0xff]  ;;  %v89_v1 = vld [vmem:[#allocation5] sm:$0xff]  ;;  %vm95_vm0 = vcmask 130048   ;;  %s366_s24 = smov [#allocation10]  }
  0x14   :  { %113 = vmatpush.msra.mxu0 %v90_v0  ;;  %v88_v2 = vld [vmem:[#allocation2] sm:$0xff]  ;;  %v135_v3 = vld [vmem:[#allocation7 + $0x78] sm:$0xff]  ;;  %v134_v4 = vld [vmem:[#allocation7 + $0x70] sm:$0xff]  ;;  %s207_s25 = sshll.u32 %s366_s24, 4  ;;  %s209_s28 = sshll.u32 %s438_s7, 4  ;;  %s208_s25 = int_to_ptr.vmem [resolvable:$true] %s207_s25  ;;  %s210_s28 = int_to_ptr.hbm [resolvable:$true] %s209_s28 }
  0x15   :  { %140 = vmatpush.msra.mxu1 %v135_v3  ;;  %v133_v5 = vld [vmem:[#allocation7 + $0x68] sm:$0xff]  ;;  %v132_v6 = vld [vmem:[#allocation7 + $0x60] sm:$0xff]  ;;  %v131_v7 = vld [vmem:[#allocation7 + $0x58] sm:$0xff] }
  0x16   :  { %114 = vmatpush.msra.mxu0 %v89_v1  ;;  %v130_v8 = vld [vmem:[#allocation7 + $0x50] sm:$0xff]  ;;  %v129_v9 = vld [vmem:[#allocation7 + $0x48] sm:$0xff]  ;;  %v128_v10 = vld [vmem:[#allocation7 + $0x40] sm:$0xff] }
  0x17   :  { %221 = vmatmul.msk.f32.vlgmr.msra.gmra.mxu0 %vm95_vm0, %v88_v2  ;;  %141 = vmatpush.msra.mxu1 %v134_v4  ;;  %v127_v11 = vld [vmem:[#allocation7 + $0x38] sm:$0xff]  ;;  %v126_v12 = vld [vmem:[#allocation7 + $0x30] sm:$0xff]  ;;  %v125_v13 = vld [vmem:[#allocation7 + $0x28] sm:$0xff] }
  0x18   :  { %v124_v14 = vld [vmem:[#allocation7 + $0x20] sm:$0xff]  ;;  %v123_v15 = vld [vmem:[#allocation7 + $0x18] sm:$0xff]  ;;  %v122_v16 = vld [vmem:[#allocation7 + $0x10] sm:$0xff] }
  0x19   :  { %142 = vmatpush.msra.mxu1 %v133_v5  ;;  %v121_v17 = vld [vmem:[#allocation7 + $0x8] sm:$0xff]  ;;  %v120_v18 = vld [vmem:[#allocation7] sm:$0xff]  ;;  %v176_v19 = vld [vmem:[#allocation8 + $0x78] sm:$0xff] }
  0x1a   :  { %v175_v20 = vld [vmem:[#allocation8 + $0x70] sm:$0xff]  ;;  %181 = vmatpush.msra.mxu2 %v176_v19  ;;  %v174_v21 = vld [vmem:[#allocation8 + $0x68] sm:$0xff]  ;;  %v173_v22 = vld [vmem:[#allocation8 + $0x60] sm:$0xff] }
  0x1b   :  { %143 = vmatpush.msra.mxu1 %v132_v6  ;;  %v172_v23 = vld [vmem:[#allocation8 + $0x58] sm:$0xff]  ;;  %v171_v24 = vld [vmem:[#allocation8 + $0x50] sm:$0xff]  ;;  %v170_v25 = vld [vmem:[#allocation8 + $0x48] sm:$0xff] }
  0x1c   :  { %182 = vmatpush.msra.mxu2 %v175_v20  ;;  %v169_v26 = vld [vmem:[#allocation8 + $0x40] sm:$0xff]  ;;  %v168_v27 = vld [vmem:[#allocation8 + $0x38] sm:$0xff]  ;;  %v167_v28 = vld [vmem:[#allocation8 + $0x30] sm:$0xff] }
  0x1d   :  { %144 = vmatpush.msra.mxu1 %v131_v7  ;;  %v166_v29 = vld [vmem:[#allocation8 + $0x28] sm:$0xff]  ;;  %v165_v30 = vld [vmem:[#allocation8 + $0x20] sm:$0xff]  ;;  %v164_v31 = vld [vmem:[#allocation8 + $0x18] sm:$0xff] }
  0x1e   :  { %183 = vmatpush.msra.mxu2 %v174_v21  ;;  %v229_v32 = vld [vmem:[%s433_s2] ss:$0 sm:$0xff]  ;;  %v163_v36 = vld [vmem:[#allocation8 + $0x10] sm:$0xff]  ;;  %v161_v38 = vld [vmem:[#allocation8] sm:$0xff] }
  0x1f   :  { %145 = vmatpush.msra.mxu1 %v130_v8  ;;  %v162_v37 = vld [vmem:[#allocation8 + $0x8] sm:$0xff] }
  0x20   :  { %184 = vmatpush.msra.mxu2 %v173_v22  ;;  %v230_v39 = vld [vmem:[%s435_s4] ss:$0 sm:$0xff] }
  0x21   :  { %146 = vmatpush.msra.mxu1 %v129_v9  ;;  %v231_v43 = vld [vmem:[%s437_s6] ss:$0 sm:$0xff] }
  0x22   :  { %185 = vmatpush.msra.mxu2 %v172_v23 }
  0x23   :  { %147 = vmatpush.msra.mxu1 %v128_v10 }
  0x24   :  { %186 = vmatpush.msra.mxu2 %v171_v24 }
  0x25   :  { %148 = vmatpush.msra.mxu1 %v127_v11 }
  0x26   :  { %187 = vmatpush.msra.mxu2 %v170_v25 }
  0x27   :  { %149 = vmatpush.msra.mxu1 %v126_v12 }
  0x28   :  { %188 = vmatpush.msra.mxu2 %v169_v26 }
  0x29   :  { %150 = vmatpush.msra.mxu1 %v125_v13 }
  0x2a   :  { %189 = vmatpush.msra.mxu2 %v168_v27 }
  0x2b   :  { %151 = vmatpush.msra.mxu1 %v124_v14 }
  0x2c   :  { %190 = vmatpush.msra.mxu2 %v167_v28 }
  0x2d   :  { %152 = vmatpush.msra.mxu1 %v123_v15 }
  0x2e   :  { %191 = vmatpush.msra.mxu2 %v166_v29 }
  0x2f   :  { %153 = vmatpush.msra.mxu1 %v122_v16 }
  0x30   :  { %192 = vmatpush.msra.mxu2 %v165_v30 }
  0x31   :  { %154 = vmatpush.msra.mxu1 %v121_v17 }
  0x32   :  { %193 = vmatpush.msra.mxu2 %v164_v31 }
  0x33   :  { %155 = vmatpush.msra.mxu1 %v120_v18 }
  0x34   :  { %194 = vmatpush.msra.mxu2 %v163_v36 }
  0x36   :  { %195 = vmatpush.msra.mxu2 %v162_v37 }
  0x38   :  { %196 = vmatpush.msra.mxu2 %v161_v38 }
  0x94   :  { %v116_v33 = vpop.f32.mrf.mxu0 }
  0x95   :  { %v117_v34 = vadd.f32 %v229_v32, %v116_v33 }
  0x97   :  { %v119_v35 = vmax.f32 %v117_v34, 0.0 }
  0x99   :  { %156 = vmatmul.f32.vlgmr.msra.gmra.mxu1 %v119_v35 }
 0x116   :  { %v157_v40 = vpop.f32.mrf.mxu1 }
 0x117   :  { %v158_v41 = vadd.f32 %v230_v39, %v157_v40 }
 0x119   :  { %v160_v42 = vmax.f32 %v158_v41, 0.0 }
 0x11b   :  { %197 = vmatmul.f32.vlgmr.msra.gmra.mxu2 %v160_v42 }
 0x19e   :  { %v198_v44 = vpop.f32.mrf.mxu2 }
 0x19f   :  { %v199_v45 = vadd.f32 %v231_v43, %v198_v44 }
 0x1a1   :  { %201 = vst [vmem:[#allocation10] sm:$0xff] %v199_v45 }
 0x1a2   :  { %212 = dma.vmem_to_hbm [thread:$0]  %s208_s25, 128, %s210_s28, [#allocation4]  }
 0x1a3   :  { %358 = dma.done.wait [#allocation4], 128  }
 0x1a4   :  { %359 = vsyncadd [#allocation4], 4294967168 }
 0x1a5   :  { %217 = vsyncpa [#allocation3], 1 }
 0x1a6   :  { %218 = vsyncpa [#allocation6], 1 }
 0x1a7   :  { %219 = vsyncpa [#allocation9], 1 }
 0x1a8   :  { %220 = vsyncpa [#allocation4], 1 }

</bundles_post_ra>
